<compile_context>
chip_gen: v5e
topology: v5e:2x2
jax: 0.10.0
libtpu: 0.0.40
codegen_flags: <defaults>
</compile_context>

<pallas_src>
import numpy as np
import jax
import jax.numpy as jnp
from jax.experimental import pallas as pl
from jax.experimental.pallas import tpu as pltpu


# ----------------------------- Pallas kernel -----------------------------

def fused_head_kernel(patches_ref, meta_ref,
                      wp_ref, bp_ref,
                      w1_ref, b1_ref,
                      w2_ref, b2_ref,
                      wc_ref, bc_ref,
                      out_ref):
    # --- frozen-backbone stand-in: patch embedding -------------------------
    # TODO(synk): the full frozen BEiT encoder (attention/MLP blocks) is not
    # translated; a deterministic patch-embedding projection stands in for
    # `transformer(pixel_values).last_hidden_state`.
    #
    # mean-first: mean_seq(x W + b) == mean_seq(x) W + b  (exact, linearity),
    # so reduce over the sequence axis on the VPU/XLU and do ONE 2-D matmul.
    patches = patches_ref[...].astype(jnp.float32)                  # [TB, S, P]
    avg_patch = jnp.mean(patches, axis=1)                           # [TB, P]
    avg = (jnp.dot(avg_patch, wp_ref[...],
                   preferred_element_type=jnp.float32)
           + bp_ref[...])                                           # [TB, H]

    # --- metadata MLP: Linear(3->64)+ReLU, Linear(64->32)+ReLU --------------
    # metadata feature dim is zero-padded 3 -> 128 (w1 rows padded with zeros),
    # so this is lane-dense and numerically identical.
    m = meta_ref[...].astype(jnp.float32)                           # [TB, 128]
    m = jnp.dot(m, w1_ref[...], preferred_element_type=jnp.float32) + b1_ref[...]
    m = jnp.maximum(m, 0.0)
    m = jnp.dot(m, w2_ref[...], preferred_element_type=jnp.float32) + b2_ref[...]
    m = jnp.maximum(m, 0.0)                                         # [TB, 32]

    # --- classifier over concat(avg_embedding, metadata_features) -----------
    # Single K=(H+32) matmul against the full (zero-padded to 128 outputs)
    # classifier weight; the output store is a full 128-lane slab.
    combined = jnp.concatenate([avg, m], axis=1)                    # [TB, H+32]
    logits = (jnp.dot(combined, wc_ref[...],
                      preferred_element_type=jnp.float32)
              + bc_ref[...])                                        # [TB, 128]
    out_ref[...] = logits.astype(out_ref.dtype)


# ----------------------------- wrapper / glue -----------------------------

def _to_patches(pixel_values, patch_size):
    """NCHW -> [B, S, C*p*p] non-overlapping patches (plain-JAX glue)."""
    B, C, H, W = pixel_values.shape
    p = patch_size
    gh, gw = H // p, W // p
    x = pixel_values.reshape(B, C, gh, p, gw, p)
    x = x.transpose(0, 2, 4, 1, 3, 5)            # [B, gh, gw, C, p, p]
    return x.reshape(B, gh * gw, C * p * p)      # [B, S, C*p*p]


def transfer_learning_forward(pixel_values, metadata, params):
    patches = _to_patches(pixel_values, params["patch_size"])       # [B, S, P]
    B, S, P = patches.shape
    H = params["wp"].shape[1]
    NC = params["bc"].shape[-1]
    MF = params["w1"].shape[0]                  # real metadata feature count (3)

    TB = 8                                      # batch tile: multiple of 8 sublanes
    B_pad = ((B + TB - 1) // TB) * TB
    META_PAD = 128                              # lane-dense metadata features
    NC_PAD = 128                                # lane-dense output store

    f32 = jnp.float32
    patches_p = jnp.zeros((B_pad, S, P), f32).at[:B].set(patches.astype(f32))
    meta_p = jnp.zeros((B_pad, META_PAD), f32).at[:B, :MF].set(metadata.astype(f32))
    w1_p = jnp.zeros((META_PAD, params["w1"].shape[1]), f32).at[:MF].set(params["w1"])
    wc_p = jnp.zeros((params["wc"].shape[0], NC_PAD), f32).at[:, :NC].set(params["wc"])
    bc_p = jnp.zeros((1, NC_PAD), f32).at[:, :NC].set(params["bc"])

    grid = (B_pad // TB,)
    const2d = lambda i: (0, 0)                  # weights resident across the grid

    kernel = pl.pallas_call(
        fused_head_kernel,
        out_shape=jax.ShapeDtypeStruct((B_pad, NC_PAD), f32),
        grid=grid,
        in_specs=[
            pl.BlockSpec((TB, S, P), lambda i: (i, 0, 0)),      # patches (batch-tiled)
            pl.BlockSpec((TB, META_PAD), lambda i: (i, 0)),     # metadata (batch-tiled)
            pl.BlockSpec((P, H), const2d),                      # wp
            pl.BlockSpec((1, H), const2d),                      # bp
            pl.BlockSpec((META_PAD, 64), const2d),              # w1 (padded rows)
            pl.BlockSpec((1, 64), const2d),                     # b1
            pl.BlockSpec((64, 32), const2d),                    # w2
            pl.BlockSpec((1, 32), const2d),                     # b2
            pl.BlockSpec((H + 32, NC_PAD), const2d),            # wc (padded cols)
            pl.BlockSpec((1, NC_PAD), const2d),                 # bc (padded)
        ],
        out_specs=pl.BlockSpec((TB, NC_PAD), lambda i: (i, 0)),
        compiler_params=pltpu.CompilerParams(
            dimension_semantics=("parallel",),
            vmem_limit_bytes=48 * 1024 * 1024,
        ),
    )
    out_padded = kernel(patches_p, meta_p,
                        params["wp"], params["bp"],
                        w1_p, params["b1"],
                        params["w2"], params["b2"],
                        wc_p, bc_p)
    return out_padded[:B, :NC]                  # strip batch / lane padding


def reference_forward(pixel_values, metadata, params):
    """Pure-JAX reference mirroring the PyTorch forward (full hidden state,
    mean AFTER projection, explicit concat) — validates the mean-first rewrite."""
    patches = _to_patches(pixel_values, params["patch_size"])
    hidden = jnp.einsum("bsp,ph->bsh", patches, params["wp"]) + params["bp"]
    avg = hidden.mean(axis=1)
    m = jnp.maximum(metadata @ params["w1"] + params["b1"], 0.0)
    m = jnp.maximum(m @ params["w2"] + params["b2"], 0.0)
    combined = jnp.concatenate([avg, m], axis=1)
    return combined @ params["wc"] + params["bc"]


# ----------------------------- params -----------------------------

def init_params(key, *, patch_size=8, in_chans=3, hidden_size=32, num_classes=5):
    # Note: PyTorch nn.Linear stores weight as [out, in]; we store [in, out]
    # (pre-transposed), which is semantically identical for y = x W^T + b.
    P = in_chans * patch_size * patch_size
    ks = jax.random.split(key, 8)

    def lin_w(k, fan_in, fan_out):
        return (jax.random.normal(k, (fan_in, fan_out), jnp.float32)
                / np.sqrt(fan_in)).astype(jnp.float32)

    return dict(
        patch_size=patch_size,
        # frozen-backbone stand-in (patch embedding)
        wp=lin_w(ks[0], P, hidden_size),
        bp=jnp.full((1, hidden_size), 0.01, jnp.float32),
        # metadata_mlp = Linear(3,64) ReLU Linear(64,32) ReLU
        w1=lin_w(ks[1], 3, 64),
        b1=(jax.random.normal(ks[2], (1, 64), jnp.float32) * 0.01),
        w2=lin_w(ks[3], 64, 32),
        b2=(jax.random.normal(ks[4], (1, 32), jnp.float32) * 0.01),
        # classifier = Linear(hidden_size + 32, num_classes)
        wc=lin_w(ks[5], hidden_size + 32, num_classes),
        bc=(jax.random.normal(ks[6], (1, num_classes), jnp.float32) * 0.01),
    )


# ----------------------------- main -----------------------------

if __name__ == "__main__":
    key = jax.random.PRNGKey(0)
    k_px, k_meta, k_params = jax.random.split(key, 3)

    B, C, H, W = 2, 3, 16, 16          # small BEiT-style image input (NCHW)
    hidden_size, num_classes = 32, 5

    pixel_values = jax.random.normal(k_px, (B, C, H, W), jnp.float32)
    metadata = jax.random.normal(k_meta, (B, 3), jnp.float32)
    params = init_params(k_params, patch_size=8, in_chans=C,
                         hidden_size=hidden_size, num_classes=num_classes)

    logits = transfer_learning_forward(pixel_values, metadata, params)
    logits = jax.block_until_ready(logits)

    ref = reference_forward(pixel_values, metadata, params)
    np.testing.assert_allclose(np.asarray(logits), np.asarray(ref),
                               rtol=1e-3, atol=1e-3)
    assert logits.shape == (B, num_classes)
    print("KERNEL_OK")
</pallas_src>

<mosaic_0001>
module attributes {stable_mosaic.version = 11 : i64} {
  func.func @fused_head_kernel(%arg0: i32, %arg1: memref<8x4x192xf32, #tpu.memory_space<vmem>>, %arg2: memref<8x128xf32, #tpu.memory_space<vmem>>, %arg3: memref<192x32xf32, #tpu.memory_space<vmem>>, %arg4: memref<1x32xf32, #tpu.memory_space<vmem>>, %arg5: memref<128x64xf32, #tpu.memory_space<vmem>>, %arg6: memref<1x64xf32, #tpu.memory_space<vmem>>, %arg7: memref<64x32xf32, #tpu.memory_space<vmem>>, %arg8: memref<1x32xf32, #tpu.memory_space<vmem>>, %arg9: memref<64x128xf32, #tpu.memory_space<vmem>>, %arg10: memref<1x128xf32, #tpu.memory_space<vmem>>, %arg11: memref<8x128xf32, #tpu.memory_space<vmem>>) attributes {dimension_semantics = [#tpu.dimension_semantics<parallel>], iteration_bounds = array<i64: 1>, scalar_prefetch = 0 : i64, scratch_operands = 0 : i64, tpu.core_type = #tpu.core_type<tc>, window_params = [{transform_indices = @transform_0, window_bounds = array<i64: 8, 4, 192>}, {transform_indices = @transform_1, window_bounds = array<i64: 8, 128>}, {pipeline_mode = #tpu.pipeline_mode<synchronous>, transform_indices = @transform_2, window_bounds = array<i64: 192, 32>}, {pipeline_mode = #tpu.pipeline_mode<synchronous>, transform_indices = @transform_3, window_bounds = array<i64: 1, 32>}, {pipeline_mode = #tpu.pipeline_mode<synchronous>, transform_indices = @transform_4, window_bounds = array<i64: 128, 64>}, {pipeline_mode = #tpu.pipeline_mode<synchronous>, transform_indices = @transform_5, window_bounds = array<i64: 1, 64>}, {pipeline_mode = #tpu.pipeline_mode<synchronous>, transform_indices = @transform_6, window_bounds = array<i64: 64, 32>}, {pipeline_mode = #tpu.pipeline_mode<synchronous>, transform_indices = @transform_7, window_bounds = array<i64: 1, 32>}, {pipeline_mode = #tpu.pipeline_mode<synchronous>, transform_indices = @transform_8, window_bounds = array<i64: 64, 128>}, {pipeline_mode = #tpu.pipeline_mode<synchronous>, transform_indices = @transform_9, window_bounds = array<i64: 1, 128>}, {transform_indices = @transform_10, window_bounds = array<i64: 8, 128>}]} {
    %c0 = arith.constant 0 : index
    %c0_0 = arith.constant 0 : index
    %c0_1 = arith.constant 0 : index
    %0 = vector.load %arg1[%c0, %c0_0, %c0_1] : memref<8x4x192xf32, #tpu.memory_space<vmem>>, vector<8x4x192xf32>
    %cst = arith.constant dense<0.000000e+00> : vector<8x192xf32>
    %1 = vector.multi_reduction <add>, %0, %cst [1] : vector<8x4x192xf32> to vector<8x192xf32>
    %cst_2 = arith.constant 4.000000e+00 : f32
    %2 = vector.broadcast %cst_2 : f32 to vector<8x192xf32>
    %3 = arith.divf %1, %2 : vector<8x192xf32>
    %c0_3 = arith.constant 0 : index
    %c0_4 = arith.constant 0 : index
    %4 = vector.load %arg3[%c0_3, %c0_4] : memref<192x32xf32, #tpu.memory_space<vmem>>, vector<192x32xf32>
    %cst_5 = arith.constant dense<0.000000e+00> : vector<8x32xf32>
    %5 = tpu.matmul %3, %4, %cst_5 {dimension_numbers = #tpu.dot_dimension_numbers<[1], [0], [0], [1], [0, 0, 1, 1], [], []>} : vector<8x192xf32>, vector<192x32xf32>, vector<8x32xf32> -> vector<8x32xf32>
    %c0_6 = arith.constant 0 : index
    %c0_7 = arith.constant 0 : index
    %6 = vector.load %arg4[%c0_6, %c0_7] : memref<1x32xf32, #tpu.memory_space<vmem>>, vector<1x32xf32>
    %7 = vector.broadcast %6 : vector<1x32xf32> to vector<8x32xf32>
    %8 = arith.addf %5, %7 : vector<8x32xf32>
    %c0_8 = arith.constant 0 : index
    %c0_9 = arith.constant 0 : index
    %9 = vector.load %arg2[%c0_8, %c0_9] : memref<8x128xf32, #tpu.memory_space<vmem>>, vector<8x128xf32>
    %c0_10 = arith.constant 0 : index
    %c0_11 = arith.constant 0 : index
    %10 = vector.load %arg5[%c0_10, %c0_11] : memref<128x64xf32, #tpu.memory_space<vmem>>, vector<128x64xf32>
    %cst_12 = arith.constant dense<0.000000e+00> : vector<8x64xf32>
    %11 = tpu.matmul %9, %10, %cst_12 {dimension_numbers = #tpu.dot_dimension_numbers<[1], [0], [0], [1], [0, 0, 1, 1], [], []>} : vector<8x128xf32>, vector<128x64xf32>, vector<8x64xf32> -> vector<8x64xf32>
    %c0_13 = arith.constant 0 : index
    %c0_14 = arith.constant 0 : index
    %12 = vector.load %arg6[%c0_13, %c0_14] : memref<1x64xf32, #tpu.memory_space<vmem>>, vector<1x64xf32>
    %13 = vector.broadcast %12 : vector<1x64xf32> to vector<8x64xf32>
    %14 = arith.addf %11, %13 : vector<8x64xf32>
    %cst_15 = arith.constant 0.000000e+00 : f32
    %15 = vector.broadcast %cst_15 : f32 to vector<8x64xf32>
    %16 = arith.maximumf %14, %15 : vector<8x64xf32>
    %c0_16 = arith.constant 0 : index
    %c0_17 = arith.constant 0 : index
    %17 = vector.load %arg7[%c0_16, %c0_17] : memref<64x32xf32, #tpu.memory_space<vmem>>, vector<64x32xf32>
    %cst_18 = arith.constant dense<0.000000e+00> : vector<8x32xf32>
    %18 = tpu.matmul %16, %17, %cst_18 {dimension_numbers = #tpu.dot_dimension_numbers<[1], [0], [0], [1], [0, 0, 1, 1], [], []>} : vector<8x64xf32>, vector<64x32xf32>, vector<8x32xf32> -> vector<8x32xf32>
    %c0_19 = arith.constant 0 : index
    %c0_20 = arith.constant 0 : index
    %19 = vector.load %arg8[%c0_19, %c0_20] : memref<1x32xf32, #tpu.memory_space<vmem>>, vector<1x32xf32>
    %20 = vector.broadcast %19 : vector<1x32xf32> to vector<8x32xf32>
    %21 = arith.addf %18, %20 : vector<8x32xf32>
    %cst_21 = arith.constant 0.000000e+00 : f32
    %22 = vector.broadcast %cst_21 : f32 to vector<8x32xf32>
    %23 = arith.maximumf %21, %22 : vector<8x32xf32>
    %24 = tpu.concatenate %8, %23 in 1 : vector<8x32xf32>, vector<8x32xf32> -> vector<8x64xf32>
    %c0_22 = arith.constant 0 : index
    %c0_23 = arith.constant 0 : index
    %25 = vector.load %arg9[%c0_22, %c0_23] : memref<64x128xf32, #tpu.memory_space<vmem>>, vector<64x128xf32>
    %cst_24 = arith.constant dense<0.000000e+00> : vector<8x128xf32>
    %26 = tpu.matmul %24, %25, %cst_24 {dimension_numbers = #tpu.dot_dimension_numbers<[1], [0], [0], [1], [0, 0, 1, 1], [], []>} : vector<8x64xf32>, vector<64x128xf32>, vector<8x128xf32> -> vector<8x128xf32>
    %c0_25 = arith.constant 0 : index
    %c0_26 = arith.constant 0 : index
    %27 = vector.load %arg10[%c0_25, %c0_26] : memref<1x128xf32, #tpu.memory_space<vmem>>, vector<1x128xf32>
    %28 = vector.broadcast %27 : vector<1x128xf32> to vector<8x128xf32>
    %29 = arith.addf %26, %28 : vector<8x128xf32>
    %c0_27 = arith.constant 0 : index
    %c0_28 = arith.constant 0 : index
    %30 = vector.load %arg11[%c0_27, %c0_28] : memref<8x128xf32, #tpu.memory_space<vmem>>, vector<8x128xf32>
    tpu.vector_store %arg11[%c0_27, %c0_28], %29 {strides = array<i32>} : memref<8x128xf32, #tpu.memory_space<vmem>>, vector<8x128xf32>,
    return
  }
  func.func @transform_0(%arg0: i32) -> (i32, i32, i32) {
    %c0_i32 = arith.constant 0 : i32
    %c0_i32_0 = arith.constant 0 : i32
    %c0_i32_1 = arith.constant 0 : i32
    return %arg0, %c0_i32, %c0_i32_0 : i32, i32, i32
  }
  func.func @transform_1(%arg0: i32) -> (i32, i32) {
    %c0_i32 = arith.constant 0 : i32
    %c0_i32_0 = arith.constant 0 : i32
    return %arg0, %c0_i32 : i32, i32
  }
  func.func @transform_2(%arg0: i32) -> (i32, i32) {
    %c0_i32 = arith.constant 0 : i32
    %c0_i32_0 = arith.constant 0 : i32
    %c0_i32_1 = arith.constant 0 : i32
    return %c0_i32, %c0_i32_0 : i32, i32
  }
  func.func @transform_3(%arg0: i32) -> (i32, i32) {
    %c0_i32 = arith.constant 0 : i32
    %c0_i32_0 = arith.constant 0 : i32
    %c0_i32_1 = arith.constant 0 : i32
    return %c0_i32, %c0_i32_0 : i32, i32
  }
  func.func @transform_4(%arg0: i32) -> (i32, i32) {
    %c0_i32 = arith.constant 0 : i32
    %c0_i32_0 = arith.constant 0 : i32
    %c0_i32_1 = arith.constant 0 : i32
    return %c0_i32, %c0_i32_0 : i32, i32
  }
  func.func @transform_5(%arg0: i32) -> (i32, i32) {
    %c0_i32 = arith.constant 0 : i32
    %c0_i32_0 = arith.constant 0 : i32
    %c0_i32_1 = arith.constant 0 : i32
    return %c0_i32, %c0_i32_0 : i32, i32
  }
  func.func @transform_6(%arg0: i32) -> (i32, i32) {
    %c0_i32 = arith.constant 0 : i32
    %c0_i32_0 = arith.constant 0 : i32
    %c0_i32_1 = arith.constant 0 : i32
    return %c0_i32, %c0_i32_0 : i32, i32
  }
  func.func @transform_7(%arg0: i32) -> (i32, i32) {
    %c0_i32 = arith.constant 0 : i32
    %c0_i32_0 = arith.constant 0 : i32
    %c0_i32_1 = arith.constant 0 : i32
    return %c0_i32, %c0_i32_0 : i32, i32
  }
  func.func @transform_8(%arg0: i32) -> (i32, i32) {
    %c0_i32 = arith.constant 0 : i32
    %c0_i32_0 = arith.constant 0 : i32
    %c0_i32_1 = arith.constant 0 : i32
    return %c0_i32, %c0_i32_0 : i32, i32
  }
  func.func @transform_9(%arg0: i32) -> (i32, i32) {
    %c0_i32 = arith.constant 0 : i32
    %c0_i32_0 = arith.constant 0 : i32
    %c0_i32_1 = arith.constant 0 : i32
    return %c0_i32, %c0_i32_0 : i32, i32
  }
  func.func @transform_10(%arg0: i32) -> (i32, i32) {
    %c0_i32 = arith.constant 0 : i32
    %c0_i32_0 = arith.constant 0 : i32
    return %arg0, %c0_i32 : i32, i32
  }
}

</mosaic_0001>

<bundles_post_ra>
// kernel: tpu_custom_call.1
= control target key start
LH: loop header
LB: loop body
LE: loop exit
PB: predicated region body
PF: predicated region fallthrough
CT: control target
= control target key end

     0   :  { %s852_s0 = inlined_call_operand.vmem [shape: f32[8,4,192], index: 0, kind: input, shape index: {}]   ;;  %s853_s1 = inlined_call_operand.vmem [shape: f32[8,128], index: 1, kind: input, shape index: {}]   ;;  %s854_s2 = inlined_call_operand.vmem [shape: f32[192,32], index: 2, kind: input, shape index: {}]   ;;  %s855_s3 = inlined_call_operand.vmem [shape: f32[1,32], index: 3, kind: input, shape index: {}]   ;;  %s856_s4 = inlined_call_operand.vmem [shape: f32[128,64], index: 4, kind: input, shape index: {}]   ;;  %s857_s5 = inlined_call_operand.vmem [shape: f32[1,64], index: 5, kind: input, shape index: {}]   ;;  %s858_s6 = inlined_call_operand.vmem [shape: f32[64,32], index: 6, kind: input, shape index: {}]   ;;  %s859_s7 = inlined_call_operand.vmem [shape: f32[1,32], index: 7, kind: input, shape index: {}]   ;;  %s860_s8 = inlined_call_operand.vmem [shape: f32[64,128], index: 8, kind: input, shape index: {}]   ;;  %s861_s9 = inlined_call_operand.vmem [shape: f32[1,128], index: 9, kind: input, shape index: {}]   ;;  %s862_s10 = inlined_call_operand.hbm [shape: f32[8,128], index: 10, kind: output, shape index: {}]  }
   0x1   :  { %v357_v0 = vld [vmem:[%s856_s4 + $0x78] sm:$0xff]  ;;  %v356_v1 = vld [vmem:[%s856_s4 + $0x70] sm:$0xff]  ;;  %v355_v2 = vld [vmem:[%s856_s4 + $0x68] sm:$0xff] }
   0x2   :  { %362 = vmatpush.msra.mxu2 %v357_v0  ;;  %v354_v3 = vld [vmem:[%s856_s4 + $0x60] sm:$0xff]  ;;  %v390_v4 = vld [vmem:[%s858_s6 + $0x38] sm:$0xff]  ;;  %v389_v6 = vld [vmem:[%s858_s6 + $0x30] sm:$0xff] }
   0x3   :  { %v353_v5 = vld [vmem:[%s856_s4 + $0x58] sm:$0xff]  ;;  %406 = vmatpush.msra.mxu3 %v390_v4  ;;  %v352_v7 = vld [vmem:[%s856_s4 + $0x50] sm:$0xff]  ;;  %v388_v8 = vld [vmem:[%s858_s6 + $0x28] sm:$0xff] }
   0x4   :  { %363 = vmatpush.msra.mxu2 %v356_v1  ;;  %v387_v9 = vld [vmem:[%s858_s6 + $0x20] sm:$0xff] }
   0x5   :  { %407 = vmatpush.msra.mxu3 %v389_v6 }
   0x6   :  { %364 = vmatpush.msra.mxu2 %v355_v2 }
   0x8   :  { %365 = vmatpush.msra.mxu2 %v354_v3 }
   0xa   :  { %366 = vmatpush.msra.mxu2 %v353_v5 }
   0xb   :  { %15 = vsyncpa [#allocation3], 0  ;;  %v351_v10 = vld [vmem:[%s856_s4 + $0x48] sm:$0xff]  ;;  %408 = vmatpush.msra.mxu3 %v388_v8  ;;  %v386_v11 = vld [vmem:[%s858_s6 + $0x18] sm:$0xff]  ;;  %v515_v43 = vmov 4.0   ;;  %vm95_vm0 = vcmask 1043456  }
   0xc   :  { %367 = vmatpush.msra.mxu2 %v352_v7  ;;  %v350_v12 = vld [vmem:[%s856_s4 + $0x40] sm:$0xff]  ;;  %v349_v13 = vld [vmem:[%s856_s4 + $0x38] sm:$0xff]  ;;  %v348_v14 = vld [vmem:[%s856_s4 + $0x30] sm:$0xff]  ;;  %487 = vrcp.f32 %v515_v43  ;;  %vm298_vm1 = vcmask 523264   ;;  %vm103_vm3 = vcmask 519168   ;;  %vm276_vm4 = vcmask 1041409  }
   0xd   :  { %409 = vmatpush.msra.mxu3 %v387_v9  ;;  %v347_v15 = vld [vmem:[%s856_s4 + $0x28] sm:$0xff]  ;;  %v346_v16 = vld [vmem:[%s856_s4 + $0x20] sm:$0xff]  ;;  %v345_v17 = vld [vmem:[%s856_s4 + $0x18] sm:$0xff]  ;;  %vm278_vm5 = vcmask 1042434   ;;  %vm280_vm6 = vcmask 1043459   ;;  %vm282_vm7 = vcmask 1044484  }
   0xe   :  { %368 = vmatpush.msra.mxu2 %v351_v10  ;;  %v344_v18 = vld [vmem:[%s856_s4 + $0x10] sm:$0xff]  ;;  %v343_v19 = vld [vmem:[%s856_s4 + $0x8] sm:$0xff]  ;;  %v342_v20 = vld [vmem:[%s856_s4] sm:$0xff]  ;;  %vm284_vm8 = vcmask 1045509   ;;  %vm286_vm9 = vcmask 1046534   ;;  %vm288_vm10 = vcmask 1047559  }
   0xf   :  { %410 = vmatpush.msra.mxu3 %v386_v11  ;;  %v341_v21 = vld [vmem:[%s853_s1] sm:$0xff]  ;;  %v385_v22 = vld [vmem:[%s858_s6 + $0x10] sm:$0xff]  ;;  %v384_v23 = vld [vmem:[%s858_s6 + $0x8] sm:$0xff]  ;;  %s516_s29 = smov 32   ;;  %vm423_vm11 = vcmask 261120   ;;  %s468_s17 = sshll.u32 %s862_s10, 4  ;;  %s469_s17 = int_to_ptr.hbm [resolvable:$true] %s468_s17 }
  0x10   :  { %369 = vmatpush.msra.mxu2 %v350_v12  ;;  %v383_v24 = vld [vmem:[%s858_s6] sm:$0xff]  ;;  %v247_v25 = vld [vmem:[%s854_s2 + $0x78] sm:$0xff]  ;;  %v246_v26 = vld [vmem:[%s854_s2 + $0x70] sm:$0xff] }
  0x11   :  { %411 = vmatpush.msra.mxu3 %v385_v22  ;;  %301 = vmatpush.msra.mxu0 %v247_v25  ;;  %v245_v27 = vld [vmem:[%s854_s2 + $0x68] sm:$0xff]  ;;  %v255_v28 = vld [vmem:[%s854_s2 + $0xb8] sm:$0xff]  ;;  %v244_v29 = vld [vmem:[%s854_s2 + $0x60] sm:$0xff] }
  0x12   :  { %370 = vmatpush.msra.mxu2 %v349_v13  ;;  %329 = vmatpush.msra.mxu1 %v255_v28  ;;  %v254_v30 = vld [vmem:[%s854_s2 + $0xb0] sm:$0xff]  ;;  %v253_v31 = vld [vmem:[%s854_s2 + $0xa8] sm:$0xff]  ;;  %v243_v32 = vld [vmem:[%s854_s2 + $0x58] sm:$0xff]  ;;  %v726_v58 = vpop.eup %487 }
  0x13   :  { %412 = vmatpush.msra.mxu3 %v384_v23  ;;  %302 = vmatpush.msra.mxu0 %v246_v26  ;;  %v242_v33 = vld [vmem:[%s854_s2 + $0x50] sm:$0xff]  ;;  %v252_v34 = vld [vmem:[%s854_s2 + $0xa0] sm:$0xff]  ;;  %v37_v36 = vld [vmem:[%s852_s0 + $0x8] sm:$0xff]  ;;  %v210_v6 = vmul.f32 4.0, %v726_v58  ;;  %vm214_vm2 = vweird.f32 %v726_v58 }
  0x14   :  { %371 = vmatpush.msra.mxu2 %v348_v14  ;;  %330 = vmatpush.msra.mxu1 %v254_v30  ;;  %v36_v35 = vld [vmem:[%s852_s0] sm:$0xff]  ;;  %v38_v37 = vld [vmem:[%s852_s0 + $0x10] sm:$0xff]  ;;  %v39_v38 = vld [vmem:[%s852_s0 + $0x18] sm:$0xff]  ;;  %56 = vst [vmem:[#allocation1 + $0x10] ss:$2 sm:$0xff] %v37_v36 }
  0x15   :  { %413 = vmatpush.msra.mxu3 %v383_v24  ;;  %303 = vmatpush.msra.mxu0 %v245_v27  ;;  %52 = vst [vmem:[#allocation1] ss:$2 sm:$0xff] %v36_v35  ;;  %v251_v39 = vld [vmem:[%s854_s2 + $0x98] sm:$0xff]  ;;  %v241_v40 = vld [vmem:[%s854_s2 + $0x48] sm:$0xff]  ;;  %v250_v41 = vld [vmem:[%s854_s2 + $0x90] sm:$0xff]  ;;  %v211_v14 = vsub.f32 1.0, %v210_v6 }
  0x16   :  { %372 = vmatpush.msra.mxu2 %v347_v15  ;;  %331 = vmatpush.msra.mxu1 %v253_v31  ;;  %60 = vst [vmem:[#allocation1 + $0x20] ss:$2 sm:$0xff] %v38_v37  ;;  %v240_v42 = vld [vmem:[%s854_s2 + $0x40] sm:$0xff]  ;;  %v249_v44 = vld [vmem:[%s854_s2 + $0x88] sm:$0xff]  ;;  %v239_v45 = vld [vmem:[%s854_s2 + $0x38] sm:$0xff] }
  0x17   :  { %304 = vmatpush.msra.mxu0 %v244_v29  ;;  %64 = vst [vmem:[#allocation1 + $0x30] ss:$2 sm:$0xff] %v39_v38  ;;  %v238_v46 = vld [vmem:[%s854_s2 + $0x30] sm:$0xff]  ;;  %v40_v47 = vld [vmem:[%s852_s0 + $0x20] sm:$0xff]  ;;  %v41_v48 = vld [vmem:[%s852_s0 + $0x28] sm:$0xff]  ;;  %v212_v23 = vmul.f32 %v726_v58, %v211_v14 }
  0x18   :  { %373 = vmatpush.msra.mxu2 %v346_v16  ;;  %332 = vmatpush.msra.mxu1 %v252_v34  ;;  %v237_v51 = vld [vmem:[%s854_s2 + $0x28] sm:$0xff]  ;;  %v42_v52 = vld [vmem:[%s852_s0 + $0x30] sm:$0xff]  ;;  %v43_v55 = vld [vmem:[%s852_s0 + $0x38] sm:$0xff] }
  0x19   :  { %305 = vmatpush.msra.mxu0 %v243_v32  ;;  %v236_v59 = vld [vmem:[%s854_s2 + $0x20] sm:$0xff]  ;;  %v235_v8 = vld [vmem:[%s854_s2 + $0x18] sm:$0xff]  ;;  %v233_v27 = vld [vmem:[%s854_s2 + $0x8] sm:$0xff]  ;;  %v213_v37 = vadd.f32 %v726_v58, %v212_v23 }
  0x1a   :  { %374 = vmatpush.msra.mxu2 %v345_v17  ;;  %333 = vmatpush.msra.mxu1 %v251_v39  ;;  %v248_v7 = vld [vmem:[%s854_s2 + $0x80] sm:$0xff] }
  0x1b   :  { %306 = vmatpush.msra.mxu0 %v242_v33  ;;  %v57_v53 = vld.sshfl [vmem:[#allocation1 + $0x10] sm:$0xff pattern:$0x75316420]  ;;  %v58_v54 = vld.sshfl [vmem:[#allocation1 + $0x18] sm:$0xff pattern:$0x75316420] }
  0x1c   :  { %375 = vmatpush.msra.mxu2 %v344_v18  ;;  %334 = vmatpush.msra.mxu1 %v250_v41  ;;  %v53_v49 = vld.sshfl [vmem:[#allocation1] sm:$0xff pattern:$0x75316420]  ;;  %v54_v50 = vld.sshfl [vmem:[#allocation1 + $0x8] sm:$0xff pattern:$0x75316420] }
  0x1d   :  { %307 = vmatpush.msra.mxu0 %v241_v40  ;;  %v61_v56 = vld.sshfl [vmem:[#allocation1 + $0x20] sm:$0xff pattern:$0x75316420]  ;;  %v62_v57 = vld.sshfl [vmem:[#allocation1 + $0x28] sm:$0xff pattern:$0x75316420] }
  0x1e   :  { %376 = vmatpush.msra.mxu2 %v343_v19  ;;  %335 = vmatpush.msra.mxu1 %v249_v44  ;;  %v65_v60 = vld.sshfl [vmem:[#allocation1 + $0x30] sm:$0xff pattern:$0x75316420]  ;;  %v731_v61 = vld.sshfl [vmem:[#allocation1 + $0x38] sm:$0xff pattern:$0x75316420] }
  0x1f   :  { %308 = vmatpush.msra.mxu0 %v240_v42  ;;  %67 = vst [vmem:[#allocation1] ss:$2 sm:$0xff] %v40_v47  ;;  %v96_v62 = vsel %vm95_vm0, %v53_v49, 0.0  ;;  %v111_v63 = vsel %vm95_vm0, %v57_v53, 0.0  ;;  %v125_v0 = vsel %vm95_vm0, %v61_v56, 0.0  ;;  %v139_v1 = vsel %vm95_vm0, %v65_v60, 0.0 }
  0x20   :  { %377 = vmatpush.msra.mxu2 %v342_v20  ;;  %70 = vst [vmem:[#allocation1 + $0x10] ss:$2 sm:$0xff] %v41_v48  ;;  %v97_v2 = vrot.slane %v96_v62, 4  ;;  %v112_v3 = vrot.slane %v111_v63, 4  ;;  %v126_v4 = vrot.slane %v125_v0, 4  ;;  %v140_v5 = vrot.slane %v139_v1, 4  ;;  %336 = vmatpush.msra.mxu1 %v248_v7 }
  0x21   :  { %378 = vmatmul.f32.vlgmr.msra.gmra.mxu2 %v341_v21  ;;  %309 = vmatpush.msra.mxu0 %v239_v45  ;;  %73 = vst [vmem:[#allocation1 + $0x20] ss:$2 sm:$0xff] %v42_v52  ;;  %v483_v13 = vld [vmem:[%s857_s5] ss:$0 sm:$0xff]  ;;  %v104_v15 = vsel %vm103_vm3, %v54_v50, 0.0  ;;  %v118_v16 = vsel %vm103_vm3, %v58_v54, 0.0  ;;  %v770_v49 = vsel %vm214_vm2, %v726_v58, %v213_v37 }
  0x22   :  { %76 = vst [vmem:[#allocation1 + $0x30] ss:$2 sm:$0xff] %v43_v55  ;;  %v98_v9 = vadd.f32 %v97_v2, %v96_v62  ;;  %v113_v10 = vadd.f32 %v112_v3, %v111_v63  ;;  %v127_v11 = vadd.f32 %v126_v4, %v125_v0  ;;  %v141_v12 = vadd.f32 %v140_v5, %v139_v1  ;;  %v234_v18 = vld [vmem:[%s854_s2 + $0x10] sm:$0xff]  ;;  %v232_v34 = vld [vmem:[%s854_s2] sm:$0xff]  ;;  %s517_s5 = smov [#allocation2]  }
  0x23   :  { %310 = vmatpush.msra.mxu0 %v238_v46  ;;  %v751_v17 = vsel %vm103_vm3, %v62_v57, 0.0  ;;  %v105_v24 = vrot.slane %v104_v15, 4  ;;  %v119_v25 = vrot.slane %v118_v16, 4  ;;  %v146_v23 = vsel %vm103_vm3, %v731_v61, 0.0 }
  0x24   :  { %v99_v19 = vrot.slane %v98_v9, 2  ;;  %v114_v20 = vrot.slane %v113_v10, 2  ;;  %v128_v21 = vrot.slane %v127_v11, 2  ;;  %v142_v22 = vrot.slane %v141_v12, 2 }
  0x25   :  { %311 = vmatpush.msra.mxu0 %v237_v51  ;;  %v133_v26 = vrot.slane %v751_v17, 4  ;;  %v106_v38 = vadd.f32 %v105_v24, %v104_v15  ;;  %v120_v39 = vadd.f32 %v119_v25, %v118_v16 }
  0x26   :  { %v68_v28 = vld.sshfl [vmem:[#allocation1] sm:$0xff pattern:$0x75316420]  ;;  %v100_v29 = vadd.f32 %v99_v19, %v98_v9  ;;  %v115_v30 = vadd.f32 %v114_v20, %v113_v10  ;;  %v129_v31 = vadd.f32 %v128_v21, %v127_v11  ;;  %v143_v32 = vadd.f32 %v142_v22, %v141_v12 }
  0x27   :  { %312 = vmatpush.msra.mxu0 %v236_v59  ;;  %v71_v35 = vld.sshfl [vmem:[#allocation1 + $0x10] sm:$0xff pattern:$0x75316420]  ;;  %v153_v36 = vsel %vm95_vm0, %v68_v28, 0.0  ;;  %v107_v6 = vrot.slane %v106_v38, 2  ;;  %v121_v14 = vrot.slane %v120_v39, 2  ;;  %v134_v19 = vadd.f32 %v133_v26, %v751_v17 }
  0x28   :  { %v74_v41 = vld.sshfl [vmem:[#allocation1 + $0x20] sm:$0xff pattern:$0x75316420]  ;;  %v101_v42 = vrot.slane %v100_v29, 1  ;;  %v116_v43 = vrot.slane %v115_v30, 1  ;;  %v130_v44 = vrot.slane %v129_v31, 1 }
  0x29   :  { %313 = vmatpush.msra.mxu0 %v235_v8  ;;  %v77_v45 = vld.sshfl [vmem:[#allocation1 + $0x30] sm:$0xff pattern:$0x75316420]  ;;  %v144_v46 = vrot.slane %v143_v32, 1  ;;  %v154_v47 = vrot.slane %v153_v36, 4  ;;  %v167_v48 = vsel %vm95_vm0, %v71_v35, 0.0  ;;  %v122_v22 = vadd.f32 %v121_v14, %v120_v39 }
  0x2a   :  { %v102_v51 = vadd.f32 %v101_v42, %v100_v29  ;;  %v117_v52 = vadd.f32 %v116_v43, %v115_v30  ;;  %v131_v53 = vadd.f32 %v130_v44, %v129_v31  ;;  %v168_v56 = vrot.slane %v167_v48, 4  ;;  %v69_v28 = vld.sshfl [vmem:[#allocation1 + $0x8] sm:$0xff pattern:$0x75316420] }
  0x2b   :  { %314 = vmatpush.msra.mxu0 %v234_v18  ;;  %v145_v54 = vadd.f32 %v144_v46, %v143_v32  ;;  %v155_v55 = vadd.f32 %v154_v47, %v153_v36  ;;  %v181_v57 = vsel %vm95_vm0, %v74_v41, 0.0  ;;  %v195_v60 = vsel %vm95_vm0, %v77_v45, 0.0  ;;  %v72_v17 = vld.sshfl [vmem:[#allocation1 + $0x18] sm:$0xff pattern:$0x75316420] }
  0x2c   :  { %v182_v59 = vrot.slane %v181_v57, 4  ;;  %v216_v62 = vmul.f32 %v770_v49, %v102_v51  ;;  %v218_v58 = vmul.f32 %v770_v49, %v117_v52  ;;  %v169_v0 = vadd.f32 %v168_v56, %v167_v48  ;;  %v75_v43 = vld.sshfl [vmem:[#allocation1 + $0x28] sm:$0xff pattern:$0x75316420] }
  0x2d   :  { %315 = vmatpush.msra.mxu0 %v233_v27  ;;  %v156_v63 = vrot.slane %v155_v55, 2  ;;  %v196_v1 = vrot.slane %v195_v60, 4  ;;  %v220_v2 = vmul.f32 %v770_v49, %v131_v53  ;;  %v222_v4 = vmul.f32 %v770_v49, %v145_v54  ;;  %v78_v46 = vld.sshfl [vmem:[#allocation1 + $0x38] sm:$0xff pattern:$0x75316420] }
  0x2e   :  { %v183_v3 = vadd.f32 %v182_v59, %v181_v57  ;;  %v277_v5 = vsel %vm276_vm4, %v218_v58, %v216_v62  ;;  %v170_v8 = vrot.slane %v169_v0, 2  ;;  %v135_v29 = vrot.slane %v134_v19, 2 }
  0x2f   :  { %316 = vmatpush.msra.mxu0 %v232_v34  ;;  %v157_v7 = vadd.f32 %v156_v63, %v155_v55  ;;  %v197_v9 = vadd.f32 %v196_v1, %v195_v60  ;;  %v279_v10 = vsel %vm278_vm5, %v220_v2, %v277_v5  ;;  %v123_v32 = vrot.slane %v122_v22, 1 }
  0x30   :  { %v184_v11 = vrot.slane %v183_v3, 2  ;;  %v281_v12 = vsel %vm280_vm6, %v222_v4, %v279_v10  ;;  %v171_v16 = vadd.f32 %v170_v8, %v169_v0  ;;  %v136_v26 = vadd.f32 %v135_v29, %v134_v19 }
  0x31   :  { %v158_v15 = vrot.slane %v157_v7, 1  ;;  %v198_v18 = vrot.slane %v197_v9, 2  ;;  %v160_v61 = vsel %vm103_vm3, %v69_v28, 0.0  ;;  %v188_v59 = vsel %vm103_vm3, %v75_v43, 0.0 }
  0x32   :  { %v185_v20 = vadd.f32 %v184_v11, %v183_v3  ;;  %v172_v25 = vrot.slane %v171_v16, 1  ;;  %v137_v44 = vrot.slane %v136_v26, 1  ;;  %v161_v48 = vrot.slane %v160_v61, 4 }
  0x33   :  { %v159_v24 = vadd.f32 %v158_v15, %v157_v7  ;;  %v199_v27 = vadd.f32 %v198_v18, %v197_v9  ;;  %v189_v58 = vrot.slane %v188_v59, 4  ;;  %v202_v63 = vsel %vm103_vm3, %v78_v46, 0.0  ;;  %v485_v46 = vld [vmem:[%s855_s3] ss:$0 sm:$0xff] }
  0x34   :  { %v186_v30 = vrot.slane %v185_v20, 1  ;;  %v173_v34 = vadd.f32 %v172_v25, %v171_v16  ;;  %v138_v53 = vadd.f32 %v137_v44, %v136_v26  ;;  %v162_v57 = vadd.f32 %v161_v48, %v160_v61  ;;  %v432_v26 = vld [vmem:[%s860_s8 + $0x38] sm:$0xff]  ;;  %v427_v61 = vld [vmem:[%s860_s8 + $0x10] sm:$0xff] }
  0x35   :  { %v200_v35 = vrot.slane %v199_v27, 1  ;;  %v224_v36 = vmul.f32 %v770_v49, %v159_v24  ;;  %v203_v2 = vrot.slane %v202_v63, 4  ;;  %v190_v5 = vadd.f32 %v189_v58, %v188_v59  ;;  %448 = vmatpush.msrb.mxu1 %v432_v26 }
  0x36   :  { %v187_v37 = vadd.f32 %v186_v30, %v185_v20  ;;  %v226_v41 = vmul.f32 %v770_v49, %v173_v34  ;;  %v163_v1 = vrot.slane %v162_v57, 2  ;;  %v221_v7 = vmul.f32 %v770_v49, %v138_v53 }
  0x37   :  { %v283_v42 = vsel %vm282_vm7, %v224_v36, %v281_v12  ;;  %v204_v10 = vadd.f32 %v203_v2, %v202_v63  ;;  %v191_v12 = vrot.slane %v190_v5, 2 }
  0x38   :  { %v228_v45 = vmul.f32 %v770_v49, %v187_v37  ;;  %v285_v52 = vsel %vm284_vm8, %v226_v41, %v283_v42  ;;  %v164_v9 = vadd.f32 %v163_v1, %v162_v57  ;;  %v431_v37 = vld [vmem:[%s860_s8 + $0x30] sm:$0xff]  ;;  %v484_v41 = vld [vmem:[%s859_s7] ss:$0 sm:$0xff] }
  0x39   :  { %v205_v15 = vrot.slane %v204_v10, 2  ;;  %v192_v20 = vadd.f32 %v191_v12, %v190_v5  ;;  %449 = vmatpush.msrb.mxu1 %v431_v37 }
  0x3a   :  { %v287_v55 = vsel %vm286_vm9, %v228_v45, %v285_v52  ;;  %v165_v14 = vrot.slane %v164_v9, 1  ;;  %v425_v45 = vld [vmem:[%s860_s8] sm:$0xff] }
  0x3b   :  { %v193_v24 = vrot.slane %v192_v20, 1 }
  0x3d   :  { %v194_v29 = vadd.f32 %v193_v24, %v192_v20 }
  0xa4   :  { %v379_v33 = vpop.f32.mrf.mxu2 }
  0xa5   :  { %v380_v40 = vadd.f32 %v483_v13, %v379_v33  ;;  %v108_v13 = vadd.f32 %v107_v6, %v106_v38  ;;  %v147_v33 = vrot.slane %v146_v23, 4  ;;  %v124_v38 = vadd.f32 %v123_v32, %v122_v22 }
  0xa6   :  { %v206_v22 = vadd.f32 %v205_v15, %v204_v10 }
  0xa7   :  { %v382_v50 = vmax.f32 %v380_v40, 0.0  ;;  %v109_v21 = vrot.slane %v108_v13, 1  ;;  %v148_v39 = vadd.f32 %v147_v33, %v146_v23  ;;  %v201_v40 = vadd.f32 %v200_v35, %v199_v27 }
  0xa8   :  { %v219_v6 = vmul.f32 %v770_v49, %v124_v38  ;;  %v207_v27 = vrot.slane %v206_v22, 1  ;;  %v229_v33 = vmul.f32 %v770_v49, %v194_v29  ;;  %v430_v38 = vld [vmem:[%s860_s8 + $0x28] sm:$0xff] }
  0xa9   :  { %478 = vmatmul.msk.f32.vlgmr.msra.gmra.mxu3 %vm298_vm1, %v382_v50  ;;  %v110_v31 = vadd.f32 %v109_v21, %v108_v13  ;;  %v149_v47 = vrot.slane %v148_v39, 2  ;;  %v174_v50 = vsel %vm103_vm3, %v72_v17, 0.0  ;;  %v230_v51 = vmul.f32 %v770_v49, %v201_v40  ;;  %450 = vmatpush.msrb.mxu1 %v430_v38  ;;  %v426_v40 = vld [vmem:[%s860_s8 + $0x8] sm:$0xff] }
  0xaa   :  { %v175_v54 = vrot.slane %v174_v50, 4  ;;  %v166_v21 = vadd.f32 %v165_v14, %v164_v9 }
  0xab   :  { %v150_v56 = vadd.f32 %v149_v47, %v148_v39  ;;  %v289_v60 = vsel %vm288_vm10, %v230_v51, %v287_v55  ;;  %v217_v3 = vmul.f32 %v770_v49, %v110_v31  ;;  %v208_v31 = vadd.f32 %v207_v27, %v206_v22  ;;  %v428_v39 = vld [vmem:[%s860_s8 + $0x18] sm:$0xff] }
  0xac   :  { %v176_v62 = vadd.f32 %v175_v54, %v174_v50  ;;  %317 = vmatmul.f32.vlgmr.msra.gmra.mxu0 %v289_v60  ;;  %v225_v28 = vmul.f32 %v770_v49, %v166_v21  ;;  %v486_v54 = vld [vmem:[%s861_s9] ss:$0 sm:$0xff] }
  0xad   :  { %v151_v0 = vrot.slane %v150_v56, 1  ;;  %v290_v13 = vsel %vm276_vm4, %v219_v6, %v217_v3  ;;  %v231_v35 = vmul.f32 %v770_v49, %v208_v31 }
  0xae   :  { %v177_v4 = vrot.slane %v176_v62, 2  ;;  %v291_v18 = vsel %vm278_vm5, %v221_v7, %v290_v13 }
  0xaf   :  { %v152_v8 = vadd.f32 %v151_v0, %v150_v56 }
  0xb0   :  { %v178_v11 = vadd.f32 %v177_v4, %v176_v62 }
  0xb1   :  { %v223_v16 = vmul.f32 %v770_v49, %v152_v8 }
  0xb2   :  { %v179_v19 = vrot.slane %v178_v11, 1 }
  0xb3   :  { %v292_v25 = vsel %vm280_vm6, %v223_v16, %v291_v18 }
  0xb4   :  { %v180_v23 = vadd.f32 %v179_v19, %v178_v11  ;;  %v293_v32 = vsel %vm282_vm7, %v225_v28, %v292_v25 }
  0xb6   :  { %v227_v30 = vmul.f32 %v770_v49, %v180_v23  ;;  %v429_v49 = vld [vmem:[%s860_s8 + $0x20] sm:$0xff]  ;;  %s466_s8 = sshll.u32 %s517_s5, 4  ;;  %s467_s8 = int_to_ptr.vmem [resolvable:$true] %s466_s8 }
  0xb7   :  { %451 = vmatpush.msrb.mxu1 %v429_v49 }
  0xb8   :  { %v294_v34 = vsel %vm284_vm8, %v227_v30, %v293_v32 }
  0xb9   :  { %v295_v36 = vsel %vm286_vm9, %v229_v33, %v294_v34  ;;  %452 = vmatpush.msrb.mxu1 %v428_v39 }
  0xba   :  { %v296_v17 = vsel %vm288_vm10, %v231_v35, %v295_v36 }
  0xbb   :  { %477 = vmatmul.msk.f32.vlgmr.msra.gmra.mxu1 %vm298_vm1, %v296_v17 }
  0xbc   :  { %453 = vmatpush.msrb.mxu1 %v427_v61 }
  0xbe   :  { %454 = vmatpush.msrb.mxu1 %v426_v40 }
  0xc0   :  { %455 = vmatpush.msrb.mxu1 %v425_v45 }
 0x129   :  { %v318_v47 = vpop.f32.mrf.mxu0 }
 0x12a   :  { %v319_v48 = vadd.f32 %v485_v46, %v318_v47 }
 0x12c   :  { %v415_v42 = vpop.f32.mrf.mxu3 }
 0x12d   :  { %v416_v43 = vadd.f32 %v484_v41, %v415_v42 }
 0x12f   :  { %v418_v44 = vmax.f32 %v416_v43, 0.0 }
 0x131   :  { %420 = vrot.lane.b32.xlu0 %v418_v44, %s516_s29 }
 0x138   :  { %v338_v50 = vpop.f32.mrf.mxu1 }
 0x139   :  { %v339_v51 = vadd.f32 %v338_v50, %v319_v48 }
 0x1a3   :  { %v421_v52 = vpop.permute.xlu0 %420 }
 0x1a4   :  { %v424_v53 = vsel %vm423_vm11, %v339_v51, %v421_v52 }
 0x1a5   :  { %479 = vmatmul.msk.f32.vlgmr.msrb.gmra.mxu1 %vm298_vm1, %v424_v53 }
 0x222   :  { %v457_v55 = vpop.f32.mrf.mxu1 }
 0x223   :  { %v458_v56 = vadd.f32 %v486_v54, %v457_v55 }
 0x225   :  { %460 = vst [vmem:[#allocation2] sm:$0xff] %v458_v56 }
 0x226   :  { %471 = dma.vmem_to_hbm [thread:$0]  %s467_s8, 128, %s469_s17, [#allocation3]  }
 0x227   :  { %513 = dma.done.wait [#allocation3], 128  }
 0x228   :  { %514 = vsyncadd [#allocation3], 4294967168 }
 0x229   :  { %476 = vsyncpa [#allocation3], 1 }

</bundles_post_ra>
